<compile_context>
chip_gen: v7x
topology: tpu7x:2x2x1
jax: 0.10.0
libtpu: 0.0.40
codegen_flags: <defaults>
</compile_context>

<pallas_src>
import functools

import jax
import jax.numpy as jnp
from jax.experimental import pallas as pl
from jax.experimental.pallas import tpu as pltpu


# ---- sizes ------------------------------------------------------------------
_D_IN, _D_H1, _D_H2, _D_OUT = 4, 10, 6, 3
_GRP = 32                      # batch rows per group (32 * 4 features = 128 lanes)
_XW = _GRP * _D_IN             # 128
_H1W = _GRP * _D_H1            # 320
_H2W = _GRP * _D_H2            # 192
_OW = _GRP * _D_OUT            # 96


def mlp_kernel(x_ref, w1_ref, b1_ref, w2_ref, b2_ref, w3_ref, b3_ref, o_ref):
    """One tile of 32-row groups: x_ref [TG, 128] -> o_ref [TG, 96]."""
    x = x_ref[...]                                                    # [TG, 128]

    # hidden1 (+ folded BN1) + ReLU      (dropout1 = identity in eval)
    h1 = jnp.dot(x, w1_ref[...], preferred_element_type=jnp.float32) + b1_ref[...]
    h1 = jnp.maximum(h1, 0.0)                                         # [TG, 320]

    # hidden2 (+ folded BN2) + ReLU      (dropout2 = identity in eval)
    h2 = jnp.dot(h1, w2_ref[...], preferred_element_type=jnp.float32) + b2_ref[...]
    h2 = jnp.maximum(h2, 0.0)                                         # [TG, 192]

    # output layer — 96-lane-dense store
    o_ref[...] = jnp.dot(h2, w3_ref[...], preferred_element_type=jnp.float32) + b3_ref[...]


def _num_tensorcores_per_device():
    # v7x (and v4/v5p megacore) expose 2 TensorCores behind one device; only on
    # those parts do we force >= 2 grid steps so dimension_semantics=("parallel",)
    # can shard the grid.  v5e / v6e have a single TC -> don't shrink the tile.
    try:
        kind = jax.devices()[0].device_kind.lower()
    except Exception:
        return 1
    return 2 if any(tag in kind for tag in ("v7", "v5p", "v4")) else 1


_NUM_CORES = _num_tensorcores_per_device()


def _step_vmem_bytes(tile_g):
    """Rough scoped-VMEM footprint of one grid step."""
    io = 2 * tile_g * (_XW + _OW) * 4                                 # double-buffered x/out
    wts = 2 * 4 * (_XW * _H1W + _H1W * _H2W + _H2W * _OW + _H1W + _H2W + _OW)
    tmp = tile_g * (_H1W + _H2W) * 4                                  # h1 / h2 temporaries
    return io + wts + tmp


def _pick_tile_g(num_groups, tile_rows, num_cores):
    tile = max(1, min(tile_rows // _GRP, num_groups))
    if num_cores > 1 and num_groups > 8:
        tile = min(tile, pl.cdiv(num_groups, num_cores))              # work for every TC
    tile = min(tile, 8192)            # ~31 MB/step ceiling (fits v6e/v7x scoped VMEM)
    if tile < num_groups:
        tile = max(8, (tile // 8) * 8)                                # (8,128) sublane rule
    return tile


@functools.partial(jax.jit, static_argnames=("tile_rows",))
def mlp_forward(x, params, *, tile_rows=65536):
    """x: [B, 4] float32  ->  [B, 3] float32 (inference forward)."""
    w1, b1, w2, b2, w3, b3 = params
    B = x.shape[0]

    # Pad the batch to a multiple of the 32-row group (copies only when needed).
    Bp = pl.cdiv(B, _GRP) * _GRP
    if Bp != B:
        x = jnp.pad(x, ((0, Bp - B), (0, 0)))

    # FREE row-major reshape: 32 batch rows ride the 128-lane axis.
    G = Bp // _GRP
    xg = x.reshape(G, _XW)                                            # [G, 128]

    tile_g = _pick_tile_g(G, int(tile_rows), _NUM_CORES)
    grid_g = pl.cdiv(G, tile_g)

    cp = dict(dimension_semantics=("parallel",))
    if _step_vmem_bytes(tile_g) > 12 * 1024 * 1024:   # past v5e's 16 MiB scoped default
        cp["vmem_limit_bytes"] = 40 * 1024 * 1024

    out_g = pl.pallas_call(
        mlp_kernel,
        out_shape=jax.ShapeDtypeStruct((G, _OW), jnp.float32),
        grid=(grid_g,),
        in_specs=[
            pl.BlockSpec((tile_g, _XW), lambda i: (i, 0)),            # x tile      [TG, 128]
            pl.BlockSpec((_XW, _H1W), lambda i: (0, 0)),              # W1 blk-diag [128, 320]
            pl.BlockSpec((1, _H1W), lambda i: (0, 0)),                # b1          [1, 320]
            pl.BlockSpec((_H1W, _H2W), lambda i: (0, 0)),             # W2 blk-diag [320, 192]
            pl.BlockSpec((1, _H2W), lambda i: (0, 0)),                # b2          [1, 192]
            pl.BlockSpec((_H2W, _OW), lambda i: (0, 0)),              # W3 blk-diag [192, 96]
            pl.BlockSpec((1, _OW), lambda i: (0, 0)),                 # b3          [1, 96]
        ],
        out_specs=pl.BlockSpec((tile_g, _OW), lambda i: (i, 0)),
        compiler_params=pltpu.CompilerParams(**cp),
    )(xg, w1, b1, w2, b2, w3, b3)

    out = out_g.reshape(Bp, _D_OUT)                                   # free reshape
    return out if Bp == B else out[:B]


def init_params(key):
    """Torch-style raw parameters (Linear [in,out] weights, BN stats)."""
    ks = jax.random.split(key, 14)

    def linear(kw, kb, fan_in, fan_out):
        bound = 1.0 / jnp.sqrt(fan_in)
        w = jax.random.uniform(kw, (fan_in, fan_out), jnp.float32, -bound, bound)
        b = jax.random.uniform(kb, (fan_out,), jnp.float32, -bound, bound)
        return w, b

    def bn(kg, kb, km, kv, n):
        gamma = jax.random.uniform(kg, (n,), jnp.float32, 0.5, 1.5)
        beta = jax.random.uniform(kb, (n,), jnp.float32, -0.5, 0.5)
        mean = 0.5 * jax.random.normal(km, (n,), jnp.float32)
        var = jax.random.uniform(kv, (n,), jnp.float32, 0.5, 1.5)
        return gamma, beta, mean, var

    w1, b1 = linear(ks[0], ks[1], _D_IN, _D_H1)
    g1, be1, m1, v1 = bn(ks[2], ks[3], ks[4], ks[5], _D_H1)
    w2, b2 = linear(ks[6], ks[7], _D_H1, _D_H2)
    g2, be2, m2, v2 = bn(ks[8], ks[9], ks[10], ks[11], _D_H2)
    w3, b3 = linear(ks[12], ks[13], _D_H2, _D_OUT)
    return (w1, b1, g1, be1, m1, v1, w2, b2, g2, be2, m2, v2, w3, b3)


def pack_params(raw, eps=1e-5):
    """Fold BN into the Linears and build 32-way block-diagonal packed weights."""
    (w1, b1, g1, be1, m1, v1,
     w2, b2, g2, be2, m2, v2,
     w3, b3) = raw

    def fold(w, b, gamma, beta, mean, var):
        # (x @ w + b) * s + t  ==  x @ (w * s) + (b * s + t)
        s = gamma / jnp.sqrt(var + eps)
        t = beta - mean * s
        return w * s[None, :], b * s + t                              # [in,out], [out]

    w1f, b1f = fold(w1, b1, g1, be1, m1, v1)
    w2f, b2f = fold(w2, b2, g2, be2, m2, v2)
    w3f, b3f = w3, b3

    def block_diag(w):
        """[in, out] -> [GRP*in, GRP*out] with GRP copies of w on the diagonal."""
        din, dout = w.shape
        eye = jnp.eye(_GRP, dtype=w.dtype)
        return jnp.einsum("gh,io->giho", eye, w).reshape(_GRP * din, _GRP * dout)

    def rep_bias(b):
        return jnp.tile(b, _GRP)[None, :]                             # [1, GRP*out]

    return (block_diag(w1f), rep_bias(b1f),
            block_diag(w2f), rep_bias(b2f),
            block_diag(w3f), rep_bias(b3f))


def reference_forward(x, raw, eps=1e-5):
    """Plain-JAX mirror of the PyTorch eval() forward (unfused, explicit BN)."""
    (w1, b1, g1, be1, m1, v1,
     w2, b2, g2, be2, m2, v2,
     w3, b3) = raw
    h = x @ w1 + b1
    h = (h - m1) * (g1 / jnp.sqrt(v1 + eps)) + be1
    h = jnp.maximum(h, 0.0)                        # dropout1: identity in eval
    h = h @ w2 + b2
    h = (h - m2) * (g2 / jnp.sqrt(v2 + eps)) + be2
    h = jnp.maximum(h, 0.0)                        # dropout2: identity in eval
    return h @ w3 + b3


if __name__ == "__main__":
    key = jax.random.PRNGKey(0)
    kx1, kx2, kp = jax.random.split(key, 3)

    raw = init_params(kp)
    packed = pack_params(raw)

    # Small, non-multiple-of-32 batch: exercises the pad-to-group path.
    B1 = 300
    x1 = jax.random.normal(kx1, (B1, _D_IN), jnp.float32)
    out1 = jax.block_until_ready(mlp_forward(x1, packed))
    ref1 = reference_forward(x1, raw)
    assert out1.shape == (B1, _D_OUT)
    assert jnp.allclose(out1, ref1, atol=1e-4, rtol=1e-4), (
        float(jnp.max(jnp.abs(out1 - ref1))))

    # Multiple-of-32 batch with a small tile: exercises a multi-step grid.
    B2 = 1024
    x2 = jax.random.normal(kx2, (B2, _D_IN), jnp.float32)
    out2 = jax.block_until_ready(mlp_forward(x2, packed, tile_rows=256))
    ref2 = reference_forward(x2, raw)
    assert out2.shape == (B2, _D_OUT)
    assert jnp.allclose(out2, ref2, atol=1e-4, rtol=1e-4), (
        float(jnp.max(jnp.abs(out2 - ref2))))

    print("KERNEL_OK")
</pallas_src>

<mosaic_0001>
module attributes {stable_mosaic.version = 11 : i64} {
  func.func @mlp_kernel(%arg0: i32, %arg1: memref<10x128xf32, #tpu.memory_space<vmem>>, %arg2: memref<128x320xf32, #tpu.memory_space<vmem>>, %arg3: memref<1x320xf32, #tpu.memory_space<vmem>>, %arg4: memref<320x192xf32, #tpu.memory_space<vmem>>, %arg5: memref<1x192xf32, #tpu.memory_space<vmem>>, %arg6: memref<192x96xf32, #tpu.memory_space<vmem>>, %arg7: memref<1x96xf32, #tpu.memory_space<vmem>>, %arg8: memref<10x96xf32, #tpu.memory_space<vmem>>) attributes {dimension_semantics = [#tpu.dimension_semantics<parallel>], iteration_bounds = array<i64: 1>, scalar_prefetch = 0 : i64, scratch_operands = 0 : i64, tpu.core_type = #tpu.core_type<tc>, window_params = [{transform_indices = @transform_0, window_bounds = array<i64: 10, 128>}, {pipeline_mode = #tpu.pipeline_mode<synchronous>, transform_indices = @transform_1, window_bounds = array<i64: 128, 320>}, {pipeline_mode = #tpu.pipeline_mode<synchronous>, transform_indices = @transform_2, window_bounds = array<i64: 1, 320>}, {pipeline_mode = #tpu.pipeline_mode<synchronous>, transform_indices = @transform_3, window_bounds = array<i64: 320, 192>}, {pipeline_mode = #tpu.pipeline_mode<synchronous>, transform_indices = @transform_4, window_bounds = array<i64: 1, 192>}, {pipeline_mode = #tpu.pipeline_mode<synchronous>, transform_indices = @transform_5, window_bounds = array<i64: 192, 96>}, {pipeline_mode = #tpu.pipeline_mode<synchronous>, transform_indices = @transform_6, window_bounds = array<i64: 1, 96>}, {transform_indices = @transform_7, window_bounds = array<i64: 10, 96>}]} {
    %c0 = arith.constant 0 : index
    %c0_0 = arith.constant 0 : index
    %0 = vector.load %arg1[%c0, %c0_0] : memref<10x128xf32, #tpu.memory_space<vmem>>, vector<10x128xf32>
    %c0_1 = arith.constant 0 : index
    %c0_2 = arith.constant 0 : index
    %1 = vector.load %arg2[%c0_1, %c0_2] : memref<128x320xf32, #tpu.memory_space<vmem>>, vector<128x320xf32>
    %cst = arith.constant dense<0.000000e+00> : vector<10x320xf32>
    %2 = tpu.matmul %0, %1, %cst {dimension_numbers = #tpu.dot_dimension_numbers<[1], [0], [0], [1], [0, 0, 1, 1], [], []>} : vector<10x128xf32>, vector<128x320xf32>, vector<10x320xf32> -> vector<10x320xf32>
    %c0_3 = arith.constant 0 : index
    %c0_4 = arith.constant 0 : index
    %3 = vector.load %arg3[%c0_3, %c0_4] : memref<1x320xf32, #tpu.memory_space<vmem>>, vector<1x320xf32>
    %4 = vector.broadcast %3 : vector<1x320xf32> to vector<10x320xf32>
    %5 = arith.addf %2, %4 : vector<10x320xf32>
    %cst_5 = arith.constant 0.000000e+00 : f32
    %6 = vector.broadcast %cst_5 : f32 to vector<10x320xf32>
    %7 = arith.maximumf %5, %6 : vector<10x320xf32>
    %c0_6 = arith.constant 0 : index
    %c0_7 = arith.constant 0 : index
    %8 = vector.load %arg4[%c0_6, %c0_7] : memref<320x192xf32, #tpu.memory_space<vmem>>, vector<320x192xf32>
    %cst_8 = arith.constant dense<0.000000e+00> : vector<10x192xf32>
    %9 = tpu.matmul %7, %8, %cst_8 {dimension_numbers = #tpu.dot_dimension_numbers<[1], [0], [0], [1], [0, 0, 1, 1], [], []>} : vector<10x320xf32>, vector<320x192xf32>, vector<10x192xf32> -> vector<10x192xf32>
    %c0_9 = arith.constant 0 : index
    %c0_10 = arith.constant 0 : index
    %10 = vector.load %arg5[%c0_9, %c0_10] : memref<1x192xf32, #tpu.memory_space<vmem>>, vector<1x192xf32>
    %11 = vector.broadcast %10 : vector<1x192xf32> to vector<10x192xf32>
    %12 = arith.addf %9, %11 : vector<10x192xf32>
    %cst_11 = arith.constant 0.000000e+00 : f32
    %13 = vector.broadcast %cst_11 : f32 to vector<10x192xf32>
    %14 = arith.maximumf %12, %13 : vector<10x192xf32>
    %c0_12 = arith.constant 0 : index
    %c0_13 = arith.constant 0 : index
    %15 = vector.load %arg6[%c0_12, %c0_13] : memref<192x96xf32, #tpu.memory_space<vmem>>, vector<192x96xf32>
    %cst_14 = arith.constant dense<0.000000e+00> : vector<10x96xf32>
    %16 = tpu.matmul %14, %15, %cst_14 {dimension_numbers = #tpu.dot_dimension_numbers<[1], [0], [0], [1], [0, 0, 1, 1], [], []>} : vector<10x192xf32>, vector<192x96xf32>, vector<10x96xf32> -> vector<10x96xf32>
    %c0_15 = arith.constant 0 : index
    %c0_16 = arith.constant 0 : index
    %17 = vector.load %arg7[%c0_15, %c0_16] : memref<1x96xf32, #tpu.memory_space<vmem>>, vector<1x96xf32>
    %18 = vector.broadcast %17 : vector<1x96xf32> to vector<10x96xf32>
    %19 = arith.addf %16, %18 : vector<10x96xf32>
    %c0_17 = arith.constant 0 : index
    %c0_18 = arith.constant 0 : index
    %20 = vector.load %arg8[%c0_17, %c0_18] : memref<10x96xf32, #tpu.memory_space<vmem>>, vector<10x96xf32>
    tpu.vector_store %arg8[%c0_17, %c0_18], %19 {strides = array<i32>} : memref<10x96xf32, #tpu.memory_space<vmem>>, vector<10x96xf32>,
    return
  }
  func.func @transform_0(%arg0: i32) -> (i32, i32) {
    %c0_i32 = arith.constant 0 : i32
    %c0_i32_0 = arith.constant 0 : i32
    return %arg0, %c0_i32 : i32, i32
  }
  func.func @transform_1(%arg0: i32) -> (i32, i32) {
    %c0_i32 = arith.constant 0 : i32
    %c0_i32_0 = arith.constant 0 : i32
    %c0_i32_1 = arith.constant 0 : i32
    return %c0_i32, %c0_i32_0 : i32, i32
  }
  func.func @transform_2(%arg0: i32) -> (i32, i32) {
    %c0_i32 = arith.constant 0 : i32
    %c0_i32_0 = arith.constant 0 : i32
    %c0_i32_1 = arith.constant 0 : i32
    return %c0_i32, %c0_i32_0 : i32, i32
  }
  func.func @transform_3(%arg0: i32) -> (i32, i32) {
    %c0_i32 = arith.constant 0 : i32
    %c0_i32_0 = arith.constant 0 : i32
    %c0_i32_1 = arith.constant 0 : i32
    return %c0_i32, %c0_i32_0 : i32, i32
  }
  func.func @transform_4(%arg0: i32) -> (i32, i32) {
    %c0_i32 = arith.constant 0 : i32
    %c0_i32_0 = arith.constant 0 : i32
    %c0_i32_1 = arith.constant 0 : i32
    return %c0_i32, %c0_i32_0 : i32, i32
  }
  func.func @transform_5(%arg0: i32) -> (i32, i32) {
    %c0_i32 = arith.constant 0 : i32
    %c0_i32_0 = arith.constant 0 : i32
    %c0_i32_1 = arith.constant 0 : i32
    return %c0_i32, %c0_i32_0 : i32, i32
  }
  func.func @transform_6(%arg0: i32) -> (i32, i32) {
    %c0_i32 = arith.constant 0 : i32
    %c0_i32_0 = arith.constant 0 : i32
    %c0_i32_1 = arith.constant 0 : i32
    return %c0_i32, %c0_i32_0 : i32, i32
  }
  func.func @transform_7(%arg0: i32) -> (i32, i32) {
    %c0_i32 = arith.constant 0 : i32
    %c0_i32_0 = arith.constant 0 : i32
    return %arg0, %c0_i32 : i32, i32
  }
}

</mosaic_0001>

<bundles_post_ra>
// kernel: mlp_forward.1
= control target key start
LH: loop header
LB: loop body
LE: loop exit
PB: predicated region body
PF: predicated region fallthrough
CT: control target
= control target key end

     0   :  { %v876_v3 = vmov 0.0   ;;  %vm343_vm0 = vcmask 523264   ;;  %vm620_vm1 = vcmask 785408   ;;  %vm622_vm2 = vcmask 779264   ;;  %s1428_s1 = inlined_call_operand.vmem [shape: f32[128,320], index: 1, kind: input, shape index: {}]   ;;  %s1429_s0 = inlined_call_operand.vmem [shape: f32[10,128], index: 0, kind: input, shape index: {}]   ;;  %s1430_s3 = inlined_call_operand.vmem [shape: f32[320,192], index: 3, kind: input, shape index: {}]   ;;  %s1431_s2 = inlined_call_operand.vmem [shape: f32[1,320], index: 2, kind: input, shape index: {}]   ;;  %s1432_s5 = inlined_call_operand.vmem [shape: f32[192,96], index: 5, kind: input, shape index: {}]   ;;  %s1433_s4 = inlined_call_operand.vmem [shape: f32[1,192], index: 4, kind: input, shape index: {}]   ;;  %s1434_s6 = inlined_call_operand.vmem [shape: f32[1,96], index: 6, kind: input, shape index: {}]   ;;  %s1435_s7 = inlined_call_operand.vmem [shape: f32[10,96], index: 7, kind: output, shape index: {}]  }
   0x1   :  { %v29_v0 = vld [vmem:[%s1428_s1 + $0x8] sm:$0xff]  ;;  %v32_v1 = vld [vmem:[%s1428_s1 + $0x20] sm:$0xff]  ;;  %v30_v2 = vld [vmem:[%s1428_s1 + $0x10] sm:$0xff]  ;;  %157 = vmatprep.mubr.f32.mxu0 %v876_v3 }
   0x2   :  { %v686_v4 = vpack.c.bf16 %v32_v1, %v29_v0  ;;  %v33_v5 = vld [vmem:[%s1428_s1 + $0x28] sm:$0xff]  ;;  %v28_v6 = vld [vmem:[%s1428_s1] sm:$0xff]  ;;  %v31_v7 = vld [vmem:[%s1428_s1 + $0x18] sm:$0xff] }
   0x3   :  { %v718_v8 = vpack.c.bf16 %v33_v5, %v30_v2  ;;  %v688_v9 = vpack.c.bf16 %v31_v7, %v28_v6  ;;  %v35_v10 = vld [vmem:[%s1428_s1 + $0x38] sm:$0xff]  ;;  %v38_v11 = vld [vmem:[%s1428_s1 + $0x50] sm:$0xff]  ;;  %v36_v12 = vld [vmem:[%s1428_s1 + $0x40] sm:$0xff] }
   0x4   :  { %687 = vmatprep.subr.bf16.mxu0 %v686_v4  ;;  %v690_v13 = vpack.c.bf16 %v38_v11, %v35_v10  ;;  %v39_v14 = vld [vmem:[%s1428_s1 + $0x58] sm:$0xff]  ;;  %v34_v15 = vld [vmem:[%s1428_s1 + $0x30] sm:$0xff]  ;;  %v37_v16 = vld [vmem:[%s1428_s1 + $0x48] sm:$0xff] }
   0x5   :  { %719 = vmatprep.subr.bf16.mxu1 %v718_v8  ;;  %689 = vmatpush1.bf16.msra.mxu0 %v688_v9  ;;  %v722_v17 = vpack.c.bf16 %v39_v14, %v36_v12  ;;  %v692_v18 = vpack.c.bf16 %v37_v16, %v34_v15  ;;  %v41_v19 = vld [vmem:[%s1428_s1 + $0x68] sm:$0xff]  ;;  %v44_v20 = vld [vmem:[%s1428_s1 + $0x80] sm:$0xff]  ;;  %v42_v21 = vld [vmem:[%s1428_s1 + $0x70] sm:$0xff] }
   0x6   :  { %721 = vmatpush3.bf16.msra.mxu1 %v718_v8  ;;  %691 = vmatprep.subr.bf16.mxu0 %v690_v13  ;;  %v694_v22 = vpack.c.bf16 %v44_v20, %v41_v19  ;;  %v45_v23 = vld [vmem:[%s1428_s1 + $0x88] sm:$0xff]  ;;  %v40_v24 = vld [vmem:[%s1428_s1 + $0x60] sm:$0xff]  ;;  %v43_v25 = vld [vmem:[%s1428_s1 + $0x78] sm:$0xff] }
   0x7   :  { %723 = vmatprep.subr.bf16.mxu1 %v722_v17  ;;  %v726_v26 = vpack.c.bf16 %v45_v23, %v42_v21  ;;  %v47_v27 = vld [vmem:[%s1428_s1 + $0x98] sm:$0xff]  ;;  %v50_v28 = vld [vmem:[%s1428_s1 + $0xb0] sm:$0xff]  ;;  %v48_v29 = vld [vmem:[%s1428_s1 + $0xa0] sm:$0xff]  ;;  %v696_v31 = vpack.c.bf16 %v43_v25, %v40_v24 }
   0x8   :  { %v51_v30 = vld [vmem:[%s1428_s1 + $0xb8] sm:$0xff]  ;;  %v698_v32 = vpack.c.bf16 %v50_v28, %v47_v27  ;;  %v46_v33 = vld [vmem:[%s1428_s1 + $0x90] sm:$0xff]  ;;  %v49_v34 = vld [vmem:[%s1428_s1 + $0xa8] sm:$0xff] }
   0x9   :  { %693 = vmatpush1.bf16.msra.mxu0 %v692_v18  ;;  %v730_v35 = vpack.c.bf16 %v51_v30, %v48_v29  ;;  %v53_v36 = vld [vmem:[%s1428_s1 + $0xc8] sm:$0xff]  ;;  %v56_v37 = vld [vmem:[%s1428_s1 + $0xe0] sm:$0xff]  ;;  %v54_v38 = vld [vmem:[%s1428_s1 + $0xd0] sm:$0xff]  ;;  %v700_v40 = vpack.c.bf16 %v49_v34, %v46_v33 }
   0xa   :  { %725 = vmatpush3.bf16.msra.mxu1 %v722_v17  ;;  %695 = vmatprep.subr.bf16.mxu0 %v694_v22  ;;  %v57_v39 = vld [vmem:[%s1428_s1 + $0xe8] sm:$0xff]  ;;  %v702_v41 = vpack.c.bf16 %v56_v37, %v53_v36  ;;  %v52_v42 = vld [vmem:[%s1428_s1 + $0xc0] sm:$0xff]  ;;  %v55_v43 = vld [vmem:[%s1428_s1 + $0xd8] sm:$0xff] }
   0xb   :  { %727 = vmatprep.subr.bf16.mxu1 %v726_v26  ;;  %v734_v44 = vpack.c.bf16 %v57_v39, %v54_v38  ;;  %v59_v45 = vld [vmem:[%s1428_s1 + $0xf8] sm:$0xff]  ;;  %v62_v46 = vld [vmem:[%s1428_s1 + $0x110] sm:$0xff]  ;;  %v60_v47 = vld [vmem:[%s1428_s1 + $0x100] sm:$0xff]  ;;  %v704_v49 = vpack.c.bf16 %v55_v43, %v52_v42 }
   0xc   :  { %v63_v48 = vld [vmem:[%s1428_s1 + $0x118] sm:$0xff]  ;;  %v26_v50 = vld [vmem:[%s1429_s0] sm:$0xff]  ;;  %v706_v51 = vpack.c.bf16 %v62_v46, %v59_v45  ;;  %v58_v52 = vld [vmem:[%s1428_s1 + $0xf0] sm:$0xff] }
   0xd   :  { %697 = vmatpush1.bf16.msra.mxu0 %v696_v31  ;;  %v61_v53 = vld [vmem:[%s1428_s1 + $0x108] sm:$0xff]  ;;  %v738_v54 = vpack.c.bf16 %v63_v48, %v60_v47  ;;  %v68_v56 = vld [vmem:[%s1428_s1 + $0x140] sm:$0xff]  ;;  %683 = vmatprep.mubr.f32.mxu1 %v26_v50  ;;  %v66_v57 = vld [vmem:[%s1428_s1 + $0x130] sm:$0xff] }
   0xe   :  { %729 = vmatpush3.bf16.msra.mxu1 %v726_v26  ;;  %699 = vmatprep.subr.bf16.mxu0 %v698_v32  ;;  %v65_v55 = vld [vmem:[%s1428_s1 + $0x128] sm:$0xff]  ;;  %v708_v59 = vpack.c.bf16 %v61_v53, %v58_v52  ;;  %v64_v61 = vld [vmem:[%s1428_s1 + $0x120] sm:$0xff]  ;;  %v67_v62 = vld [vmem:[%s1428_s1 + $0x138] sm:$0xff] }
   0xf   :  { %731 = vmatprep.subr.bf16.mxu1 %v730_v35  ;;  %v69_v58 = vld [vmem:[%s1428_s1 + $0x148] sm:$0xff]  ;;  %v710_v60 = vpack.c.bf16 %v68_v56, %v65_v55  ;;  %v71_v0 = vld [vmem:[%s1428_s1 + $0x158] sm:$0xff]  ;;  %v74_v1 = vld [vmem:[%s1428_s1 + $0x170] sm:$0xff]  ;;  %v712_v5 = vpack.c.bf16 %v67_v62, %v64_v61 }
  0x10   :  { %v742_v63 = vpack.c.bf16 %v69_v58, %v66_v57  ;;  %v72_v2 = vld [vmem:[%s1428_s1 + $0x160] sm:$0xff]  ;;  %v75_v4 = vld [vmem:[%s1428_s1 + $0x178] sm:$0xff]  ;;  %v714_v6 = vpack.c.bf16 %v74_v1, %v71_v0  ;;  %v70_v7 = vld [vmem:[%s1428_s1 + $0x150] sm:$0xff] }
  0x11   :  { %701 = vmatpush1.bf16.msra.mxu0 %v700_v40  ;;  %v73_v8 = vld [vmem:[%s1428_s1 + $0x168] sm:$0xff]  ;;  %v746_v9 = vpack.c.bf16 %v75_v4, %v72_v2  ;;  %v254_v11 = vld [vmem:[%s1430_s3 + $0x18] sm:$0xff]  ;;  %v251_v14 = vld [vmem:[%s1430_s3] sm:$0xff] }
  0x12   :  { %733 = vmatpush3.bf16.msra.mxu1 %v730_v35  ;;  %703 = vmatprep.subr.bf16.mxu0 %v702_v41  ;;  %v252_v10 = vld [vmem:[%s1430_s3 + $0x8] sm:$0xff]  ;;  %v716_v12 = vpack.c.bf16 %v73_v8, %v70_v7  ;;  %v253_v15 = vld [vmem:[%s1430_s3 + $0x10] sm:$0xff]  ;;  %v258_v17 = vld [vmem:[%s1430_s3 + $0x38] sm:$0xff] }
  0x13   :  { %735 = vmatprep.subr.bf16.mxu1 %v734_v44  ;;  %v750_v13 = vpack.c.bf16 %v254_v11, %v252_v10  ;;  %v256_v16 = vld [vmem:[%s1430_s3 + $0x28] sm:$0xff]  ;;  %v752_v20 = vpack.c.bf16 %v253_v15, %v251_v14  ;;  %v255_v21 = vld [vmem:[%s1430_s3 + $0x20] sm:$0xff]  ;;  %v257_v22 = vld [vmem:[%s1430_s3 + $0x30] sm:$0xff] }
  0x14   :  { %v27_v18 = vld [vmem:[%s1429_s0 + $0x8] sm:$0x3]  ;;  %v318_v23 = vld [vmem:[%s1430_s3 + $0x218] sm:$0xff]  ;;  %v754_v24 = vpack.c.bf16 %v258_v17, %v256_v16  ;;  %v315_v27 = vld [vmem:[%s1430_s3 + $0x200] sm:$0xff]  ;;  %v756_v35 = vpack.c.bf16 %v257_v22, %v255_v21 }
  0x15   :  { %705 = vmatpush1.bf16.msra.mxu0 %v704_v49  ;;  %v316_v19 = vld [vmem:[%s1430_s3 + $0x208] sm:$0xff]  ;;  %v317_v28 = vld [vmem:[%s1430_s3 + $0x210] sm:$0xff]  ;;  %v262_v29 = vld [vmem:[%s1430_s3 + $0x58] sm:$0xff] }
  0x16   :  { %737 = vmatpush3.bf16.msra.mxu1 %v734_v44  ;;  %707 = vmatprep.subr.bf16.mxu0 %v706_v51  ;;  %v260_v25 = vld [vmem:[%s1430_s3 + $0x48] sm:$0xff]  ;;  %v814_v26 = vpack.c.bf16 %v318_v23, %v316_v19  ;;  %v816_v30 = vpack.c.bf16 %v317_v28, %v315_v27  ;;  %v322_v32 = vld [vmem:[%s1430_s3 + $0x238] sm:$0xff]  ;;  %v319_v34 = vld [vmem:[%s1430_s3 + $0x220] sm:$0xff] }
  0x17   :  { %739 = vmatprep.subr.bf16.mxu1 %v738_v54  ;;  %v320_v31 = vld [vmem:[%s1430_s3 + $0x228] sm:$0xff]  ;;  %v259_v36 = vld [vmem:[%s1430_s3 + $0x40] sm:$0xff]  ;;  %v261_v37 = vld [vmem:[%s1430_s3 + $0x50] sm:$0xff]  ;;  %v758_v39 = vpack.c.bf16 %v262_v29, %v260_v25 }
  0x18   :  { %v818_v33 = vpack.c.bf16 %v322_v32, %v320_v31  ;;  %v321_v38 = vld [vmem:[%s1430_s3 + $0x230] sm:$0xff]  ;;  %v264_v40 = vld [vmem:[%s1430_s3 + $0x68] sm:$0xff]  ;;  %v326_v43 = vld [vmem:[%s1430_s3 + $0x258] sm:$0xff]  ;;  %v760_v48 = vpack.c.bf16 %v261_v37, %v259_v36 }
  0x19   :  { %709 = vmatpush1.bf16.msra.mxu0 %v708_v59  ;;  %v820_v41 = vpack.c.bf16 %v321_v38, %v319_v34  ;;  %v324_v42 = vld [vmem:[%s1430_s3 + $0x248] sm:$0xff]  ;;  %v266_v44 = vld [vmem:[%s1430_s3 + $0x78] sm:$0xff]  ;;  %v323_v46 = vld [vmem:[%s1430_s3 + $0x240] sm:$0xff] }
  0x1a   :  { %741 = vmatpush3.bf16.msra.mxu1 %v738_v54  ;;  %711 = vmatprep.subr.bf16.mxu0 %v710_v60  ;;  %v822_v45 = vpack.c.bf16 %v326_v43, %v324_v42  ;;  %v325_v47 = vld [vmem:[%s1430_s3 + $0x250] sm:$0xff]  ;;  %v762_v49 = vpack.c.bf16 %v266_v44, %v264_v40  ;;  %v268_v53 = vld [vmem:[%s1430_s3 + $0x88] sm:$0xff]  ;;  %v270_v54 = vld [vmem:[%s1430_s3 + $0x98] sm:$0xff] }
  0x1b   :  { %743 = vmatprep.subr.bf16.mxu1 %v742_v63  ;;  %v265_v51 = vld [vmem:[%s1430_s3 + $0x70] sm:$0xff]  ;;  %v824_v52 = vpack.c.bf16 %v325_v47, %v323_v46  ;;  %v766_v56 = vpack.c.bf16 %v270_v54, %v268_v53  ;;  %v267_v57 = vld [vmem:[%s1430_s3 + $0x80] sm:$0xff]  ;;  %v272_v59 = vld [vmem:[%s1430_s3 + $0xa8] sm:$0xff] }
  0x1c   :  { %v269_v58 = vld [vmem:[%s1430_s3 + $0x90] sm:$0xff]  ;;  %v274_v60 = vld [vmem:[%s1430_s3 + $0xb8] sm:$0xff]  ;;  %v276_v1 = vld [vmem:[%s1430_s3 + $0xc8] sm:$0xff] }
  0x1d   :  { %713 = vmatpush1.bf16.msra.mxu0 %v712_v5  ;;  %v768_v61 = vpack.c.bf16 %v269_v58, %v267_v57  ;;  %v770_v62 = vpack.c.bf16 %v274_v60, %v272_v59  ;;  %v273_v0 = vld [vmem:[%s1430_s3 + $0xb0] sm:$0xff]  ;;  %v278_v2 = vld [vmem:[%s1430_s3 + $0xd8] sm:$0xff]  ;;  %v280_v8 = vld [vmem:[%s1430_s3 + $0xe8] sm:$0xff] }
  0x1e   :  { %745 = vmatpush3.bf16.msra.mxu1 %v742_v63  ;;  %715 = vmatprep.subr.bf16.mxu0 %v714_v6  ;;  %v271_v63 = vld [vmem:[%s1430_s3 + $0xa0] sm:$0xff]  ;;  %v774_v5 = vpack.c.bf16 %v278_v2, %v276_v1  ;;  %v277_v7 = vld [vmem:[%s1430_s3 + $0xd0] sm:$0xff]  ;;  %v284_v14 = vld [vmem:[%s1430_s3 + $0x108] sm:$0xff] }
  0x1f   :  { %747 = vmatprep.subr.bf16.mxu1 %v746_v9  ;;  %v772_v4 = vpack.c.bf16 %v273_v0, %v271_v63  ;;  %v275_v6 = vld [vmem:[%s1430_s3 + $0xc0] sm:$0xff]  ;;  %v286_v15 = vld [vmem:[%s1430_s3 + $0x118] sm:$0xff]  ;;  %v285_v19 = vld [vmem:[%s1430_s3 + $0x110] sm:$0xff] }
  0x20   :  { %v776_v10 = vpack.c.bf16 %v277_v7, %v275_v6  ;;  %v782_v17 = vpack.c.bf16 %v286_v15, %v284_v14  ;;  %v290_v21 = vld [vmem:[%s1430_s3 + $0x138] sm:$0xff]  ;;  %v289_v25 = vld [vmem:[%s1430_s3 + $0x130] sm:$0xff]  ;;  %v296_v32 = vld [vmem:[%s1430_s3 + $0x168] sm:$0xff]  ;;  %v877_v6 = vmov 0.0|0.0   ;;  %v78_v7 = vlaneseq }
  0x21   :  { %717 = vmatpush1.bf16.msra.mxu0 %v716_v12  ;;  %v279_v12 = vld [vmem:[%s1430_s3 + $0xe0] sm:$0xff]  ;;  %v294_v27 = vld [vmem:[%s1430_s3 + $0x158] sm:$0xff]  ;;  %v293_v31 = vld [vmem:[%s1430_s3 + $0x150] sm:$0xff] }
  0x22   :  { %749 = vmatpush3.bf16.msra.mxu1 %v746_v9  ;;  %751 = vmatprep.subr.bf16.mxu0 %v750_v13  ;;  %v282_v9 = vld [vmem:[%s1430_s3 + $0xf8] sm:$0xff]  ;;  %v281_v13 = vld [vmem:[%s1430_s3 + $0xf0] sm:$0xff]  ;;  %v295_v36 = vld [vmem:[%s1430_s3 + $0x160] sm:$0xff] }
  0x23   :  { %815 = vmatprep.subr.bf16.mxu1 %v814_v26  ;;  %v778_v11 = vpack.c.bf16 %v282_v9, %v280_v8  ;;  %v780_v16 = vpack.c.bf16 %v281_v13, %v279_v12  ;;  %v292_v26 = vld [vmem:[%s1430_s3 + $0x148] sm:$0xff]  ;;  %v297_v37 = vld [vmem:[%s1430_s3 + $0x170] sm:$0xff]  ;;  %v299_v42 = vld [vmem:[%s1430_s3 + $0x180] sm:$0xff]  ;;  %v1312_v8 = vshrl.u32 %v78_v7, 7 }
  0x24   :  { %158 = vmatmul.mubr.f32.vlgmr.msra.gmra.mrb[0].mxu0 %v26_v50  ;;  %v263_v50 = vld [vmem:[%s1430_s3 + $0x60] sm:$0xff]  ;;  %v790_v29 = vpack.c.bf16 %v294_v27, %v292_v26  ;;  %v300_v38 = vld [vmem:[%s1430_s3 + $0x188] sm:$0xff]  ;;  %v796_v40 = vpack.c.bf16 %v297_v37, %v295_v36  ;;  %v301_v43 = vld [vmem:[%s1430_s3 + $0x190] sm:$0xff] }
  0x25   :  { %684 = vmatmul.mubr.f32.vlgmr.msra.gmra.mrb[0].mxu1 %v27_v18  ;;  %163 = vmatprep.mubr.f32.mxu0 %v876_v3  ;;  %v764_v55 = vpack.c.bf16 %v265_v51, %v263_v50  ;;  %v304_v44 = vld [vmem:[%s1430_s3 + $0x1a8] sm:$0xff]  ;;  %v800_v46 = vpack.c.bf16 %v301_v43, %v299_v42  ;;  %v310_v51 = vld [vmem:[%s1430_s3 + $0x1d8] sm:$0xff]  ;;  %v307_v54 = vld [vmem:[%s1430_s3 + $0x1c0] sm:$0xff]  ;;  %v80_v9 = vsub.s32 0, %v1312_v8  ;;  %v88_v12 = vsub.s32 2, %v1312_v8 }
  0x26   :  { %753 = vmatpush1.bf16.msra.mxu0 %v752_v20  ;;  %817 = vmatpush1.bf16.msra.mxu1 %v816_v30  ;;  %v288_v20 = vld [vmem:[%s1430_s3 + $0x128] sm:$0xff]  ;;  %v291_v30 = vld [vmem:[%s1430_s3 + $0x140] sm:$0xff]  ;;  %v330_v58 = vld [vmem:[%s1430_s3 + $0x278] sm:$0xff] }
  0x27   :  { %755 = vmatprep.subr.bf16.mxu0 %v754_v24  ;;  %819 = vmatprep.subr.bf16.mxu1 %v818_v33  ;;  %v786_v23 = vpack.c.bf16 %v290_v21, %v288_v20  ;;  %v287_v24 = vld [vmem:[%s1430_s3 + $0x120] sm:$0xff]  ;;  %v298_v33 = vld [vmem:[%s1430_s3 + $0x178] sm:$0xff]  ;;  %v792_v34 = vpack.c.bf16 %v293_v31, %v291_v30  ;;  %v308_v50 = vld [vmem:[%s1430_s3 + $0x1c8] sm:$0xff] }
  0x28   :  { %164 = vmatmul.mubr.f32.gmra.mrb[2].mxu0 %v27_v18  ;;  %491 = vmatprep.mubr.f32.mxu1 %v876_v3  ;;  %v283_v18 = vld [vmem:[%s1430_s3 + $0x100] sm:$0xff]  ;;  %v788_v28 = vpack.c.bf16 %v289_v25, %v287_v24  ;;  %v806_v53 = vpack.c.bf16 %v310_v51, %v308_v50  ;;  %v328_v57 = vld [vmem:[%s1430_s3 + $0x268] sm:$0xff]  ;;  %v329_v0 = vld [vmem:[%s1430_s3 + $0x270] sm:$0xff] }
  0x29   :  { %v784_v22 = vpack.c.bf16 %v285_v19, %v283_v18  ;;  %v826_v59 = vpack.c.bf16 %v330_v58, %v328_v57  ;;  %v312_v60 = vld [vmem:[%s1430_s3 + $0x1e8] sm:$0xff]  ;;  %v311_v1 = vld [vmem:[%s1430_s3 + $0x1e0] sm:$0xff]  ;;  %v313_v2 = vld [vmem:[%s1430_s3 + $0x1f0] sm:$0xff] }
  0x2a   :  { %757 = vmatpush1.bf16.msra.mxu0 %v756_v35  ;;  %821 = vmatpush1.bf16.msra.mxu1 %v820_v41  ;;  %v794_v35 = vpack.c.bf16 %v298_v33, %v296_v32  ;;  %v508_v20 = vld [vmem:[%s1432_s5] sm:$0xff]  ;;  %v509_v21 = vld [vmem:[%s1432_s5 + $0x8] sm:$0xff]  ;;  %v510_v33 = vld [vmem:[%s1432_s5 + $0x10] sm:$0xff] }
  0x2b   :  { %759 = vmatprep.subr.bf16.mxu0 %v758_v39  ;;  %823 = vmatprep.subr.bf16.mxu1 %v822_v45  ;;  %v302_v39 = vld [vmem:[%s1430_s3 + $0x198] sm:$0xff]  ;;  %v831_v27 = vpack.c.bf16 %v509_v21, %v508_v20  ;;  %v514_v42 = vld [vmem:[%s1432_s5 + $0x30] sm:$0xff]  ;;  %v520_v51 = vld [vmem:[%s1432_s5 + $0x60] sm:$0xff] }
  0x2c   :  { %v798_v41 = vpack.c.bf16 %v302_v39, %v300_v38  ;;  %v306_v45 = vld [vmem:[%s1430_s3 + $0x1b8] sm:$0xff]  ;;  %v524_v57 = vld [vmem:[%s1432_s5 + $0x80] sm:$0xff]  ;;  %v525_v58 = vld [vmem:[%s1432_s5 + $0x88] sm:$0xff] }
  0x2d   :  { %v802_v47 = vpack.c.bf16 %v306_v45, %v304_v44  ;;  %v515_v43 = vld [vmem:[%s1432_s5 + $0x38] sm:$0xff]  ;;  %v516_v45 = vld [vmem:[%s1432_s5 + $0x40] sm:$0xff] }
  0x2e   :  { %761 = vmatpush1.bf16.msra.mxu0 %v760_v48  ;;  %825 = vmatpush1.bf16.msra.mxu1 %v824_v52  ;;  %v303_v48 = vld [vmem:[%s1430_s3 + $0x1a0] sm:$0xff]  ;;  %v840_v44 = vpack.c.bf16 %v515_v43, %v514_v42 }
  0x2f   :  { %763 = vmatprep.subr.bf16.mxu0 %v762_v49  ;;  %v305_v49 = vld [vmem:[%s1430_s3 + $0x1b0] sm:$0xff]  ;;  %827 = vmatprep.subr.bf16.mxu1 %v826_v59  ;;  %v855_v59 = vpack.c.bf16 %v525_v58, %v524_v57  ;;  %v331_v7 = vld [vmem:[%s1433_s4] sm:$0x3] }
  0x30   :  { %v804_v52 = vpack.c.bf16 %v305_v49, %v303_v48  ;;  %v518_v48 = vld [vmem:[%s1432_s5 + $0x50] sm:$0xff]  ;;  %v519_v49 = vld [vmem:[%s1432_s5 + $0x58] sm:$0xff] }
  0x31   :  { %v846_v50 = vpack.c.bf16 %v519_v49, %v518_v48 }
  0x32   :  { %765 = vmatpush1.bf16.msra.mxu0 %v764_v55  ;;  %v309_v55 = vld [vmem:[%s1430_s3 + $0x1d0] sm:$0xff] }
  0x33   :  { %767 = vmatprep.subr.bf16.mxu0 %v766_v56  ;;  %v808_v56 = vpack.c.bf16 %v309_v55, %v307_v54  ;;  %v522_v54 = vld [vmem:[%s1432_s5 + $0x70] sm:$0xff]  ;;  %v523_v55 = vld [vmem:[%s1432_s5 + $0x78] sm:$0xff] }
  0x36   :  { %769 = vmatpush1.bf16.msra.mxu0 %v768_v61  ;;  %v314_v61 = vld [vmem:[%s1430_s3 + $0x1f8] sm:$0xff] }
  0x37   :  { %771 = vmatprep.subr.bf16.mxu0 %v770_v62  ;;  %v327_v62 = vld [vmem:[%s1430_s3 + $0x260] sm:$0xff]  ;;  %v810_v63 = vpack.c.bf16 %v314_v61, %v312_v60  ;;  %v526_v60 = vld [vmem:[%s1432_s5 + $0x90] sm:$0xff]  ;;  %v527_v61 = vld [vmem:[%s1432_s5 + $0x98] sm:$0xff] }
  0x3a   :  { %773 = vmatpush1.bf16.msra.mxu0 %v772_v4  ;;  %v828_v4 = vpack.c.bf16 %v329_v0, %v327_v62  ;;  %v858_v62 = vpack.c.bf16 %v527_v61, %v526_v60  ;;  %v529_v0 = vld [vmem:[%s1432_s5 + $0xa8] sm:$0xff] }
  0x3b   :  { %775 = vmatprep.subr.bf16.mxu0 %v774_v5  ;;  %v812_v5 = vpack.c.bf16 %v313_v2, %v311_v1  ;;  %v530_v2 = vld [vmem:[%s1432_s5 + $0xb0] sm:$0xff] }
  0x3c   :  { %829 = vmatpush1.bf16.msra.mxu1 %v828_v4  ;;  %v531_v4 = vld [vmem:[%s1432_s5 + $0xb8] sm:$0xff] }
  0x3d   :  { %830 = vmatprep.subr.bf16.mxu1 %v877_v6 }
  0x3e   :  { %777 = vmatpush1.bf16.msra.mxu0 %v776_v10  ;;  %v76_v10 = vld [vmem:[%s1431_s2] sm:$0x7] }
  0x3f   :  { %779 = vmatprep.subr.bf16.mxu0 %v778_v11  ;;  %v84_v11 = vsub.s32 1, %v1312_v8  ;;  %v81_v13 = vrot.slane %v76_v10, %v80_v9  ;;  %v89_v15 = vrot.slane %v76_v10, %v88_v12 }
  0x41   :  { %v85_v14 = vrot.slane %v76_v10, %v84_v11  ;;  %v336_v10 = vrot.slane %v331_v7, %v80_v9 }
  0x42   :  { %781 = vmatpush1.bf16.msra.mxu0 %v780_v16 }
  0x43   :  { %783 = vmatprep.subr.bf16.mxu0 %v782_v17 }
  0x46   :  { %785 = vmatpush1.bf16.msra.mxu0 %v784_v22 }
  0x47   :  { %787 = vmatprep.subr.bf16.mxu0 %v786_v23 }
  0x4a   :  { %789 = vmatpush1.bf16.msra.mxu0 %v788_v28 }
  0x4b   :  { %791 = vmatprep.subr.bf16.mxu0 %v790_v29 }
  0x4e   :  { %793 = vmatpush1.bf16.msra.mxu0 %v792_v34  ;;  %v511_v34 = vld [vmem:[%s1432_s5 + $0x18] sm:$0xff] }
  0x4f   :  { %795 = vmatprep.subr.bf16.mxu0 %v794_v35  ;;  %v834_v37 = vpack.c.bf16 %v511_v34, %v510_v33 }
  0x52   :  { %797 = vmatpush1.bf16.msra.mxu0 %v796_v40  ;;  %v512_v40 = vld [vmem:[%s1432_s5 + $0x20] sm:$0xff] }
  0x53   :  { %799 = vmatprep.subr.bf16.mxu0 %v798_v41  ;;  %v513_v41 = vld [vmem:[%s1432_s5 + $0x28] sm:$0xff] }
  0x56   :  { %801 = vmatpush1.bf16.msra.mxu0 %v800_v46  ;;  %v517_v46 = vld [vmem:[%s1432_s5 + $0x48] sm:$0xff] }
  0x57   :  { %803 = vmatprep.subr.bf16.mxu0 %v802_v47  ;;  %v843_v47 = vpack.c.bf16 %v517_v46, %v516_v45 }
  0x5a   :  { %805 = vmatpush1.bf16.msra.mxu0 %v804_v52  ;;  %v521_v52 = vld [vmem:[%s1432_s5 + $0x68] sm:$0xff] }
  0x5b   :  { %807 = vmatprep.subr.bf16.mxu0 %v806_v53  ;;  %v849_v53 = vpack.c.bf16 %v521_v52, %v520_v51 }
  0x5e   :  { %809 = vmatpush1.bf16.msra.mxu0 %v808_v56  ;;  %v852_v56 = vpack.c.bf16 %v523_v55, %v522_v54 }
  0x5f   :  { %811 = vmatprep.subr.bf16.mxu0 %v810_v63  ;;  %v528_v63 = vld [vmem:[%s1432_s5 + $0xa0] sm:$0xff] }
  0x60   :  { %v861_v1 = vpack.c.bf16 %v529_v0, %v528_v63 }
  0x62   :  { %813 = vmatpush1.bf16.msra.mxu0 %v812_v5  ;;  %v864_v5 = vpack.c.bf16 %v531_v4, %v530_v2 }
  0xf7   :  { %v159_v16 = vpop.f32.mrb[0].mxu0 }
  0xf8   :  { %v160_v17 = vadd.f32 %v159_v16, %v81_v13  ;;  %v685_v18 = vpop.f32.mrb[0].mxu1  ;;  %v161_v19 = vpop.f32.mrb[1].mxu0 }
  0xf9   :  { %v162_v22 = vadd.f32 %v161_v19, %v85_v14  ;;  %v236_v23 = vpop.f32.mrb[1].mxu1  ;;  %v242_v29 = vadd.f32 %v685_v18, %v89_v15 }
  0xfa   :  { %v237_v24 = vadd.f32 %v236_v23, %v89_v15  ;;  %v245_v28 = vmax.f32 %v160_v17, 0.0 }
  0xfb   :  { %v246_v25 = vmax.f32 %v162_v22, 0.0  ;;  %v165_v26 = vpop.f32.mrb[2].mxu0  ;;  %v250_v38 = vmax.f32 %v242_v29, 0.0  ;;  %v630_v29 = vld [vmem:[%s1434_s6] ss:$0 sm:$0xff] }
  0xfc   :  { %v247_v30 = vmax.f32 %v237_v24, 0.0  ;;  %v166_v31 = vadd.f32 %v165_v26, %v81_v13  ;;  %v167_v32 = vpop.f32.mrb[3].mxu0 }
  0xfd   :  { %v168_v35 = vadd.f32 %v167_v32, %v85_v14  ;;  %414 = vmatprep.mubr.f32.mxu0 %v246_v25 }
  0xfe   :  { %628 = vmatmul.mubr.msk.f32.vlgmr.msra.gmra.mrb[2].mxu1 %vm343_vm0, %v247_v30  ;;  %415 = vmatmul.mubr.f32.vlgmr.msra.gmra.mrb[4].mxu0 %v245_v28  ;;  %v248_v39 = vmax.f32 %v166_v31, 0.0 }
  0xff   :  { %v249_v36 = vmax.f32 %v168_v35, 0.0  ;;  %497 = vmatprep.mubr.f32.mxu1 %v876_v3  ;;  %832 = vmatpush1.bf16.msra.mxu1 %v831_v27  ;;  %v837_v3 = vpack.c.bf16 %v513_v41, %v512_v40 }
 0x100   :  { %833 = vmatprep.subr.bf16.mxu1 %v877_v6 }
 0x101   :  { %420 = vmatprep.mubr.f32.mxu0 %v249_v36 }
 0x102   :  { %629 = vmatmul.mubr.msk.f32.gmra.mrb[4].mxu1 %vm343_vm0, %v250_v38  ;;  %421 = vmatmul.mubr.f32.gmra.mrb[6].mxu0 %v248_v39 }
 0x103   :  { %835 = vmatpush1.bf16.msra.mxu1 %v834_v37 }
 0x104   :  { %836 = vmatprep.subr.bf16.mxu1 %v877_v6 }
 0x107   :  { %838 = vmatpush1.bf16.msra.mxu1 %v837_v3 }
 0x108   :  { %839 = vmatprep.subr.bf16.mxu1 %v877_v6 }
 0x10b   :  { %841 = vmatpush1.bf16.msra.mxu1 %v840_v44 }
 0x10c   :  { %842 = vmatprep.subr.bf16.mxu1 %v877_v6 }
 0x10f   :  { %844 = vmatpush1.bf16.msra.mxu1 %v843_v47 }
 0x110   :  { %845 = vmatprep.subr.bf16.mxu1 %v877_v6 }
 0x113   :  { %847 = vmatpush1.bf16.msra.mxu1 %v846_v50 }
 0x114   :  { %848 = vmatprep.subr.bf16.mxu1 %v877_v6 }
 0x117   :  { %850 = vmatpush1.bf16.msra.mxu1 %v849_v53 }
 0x118   :  { %851 = vmatprep.subr.bf16.mxu1 %v877_v6 }
 0x11b   :  { %853 = vmatpush1.bf16.msra.mxu1 %v852_v56 }
 0x11c   :  { %854 = vmatprep.subr.bf16.mxu1 %v877_v6 }
 0x11f   :  { %856 = vmatpush1.bf16.msra.mxu1 %v855_v59 }
 0x120   :  { %857 = vmatprep.subr.bf16.mxu1 %v877_v6 }
 0x123   :  { %859 = vmatpush1.bf16.msra.mxu1 %v858_v62 }
 0x124   :  { %860 = vmatprep.subr.bf16.mxu1 %v877_v6 }
 0x127   :  { %862 = vmatpush1.bf16.msra.mxu1 %v861_v1 }
 0x128   :  { %863 = vmatprep.subr.bf16.mxu1 %v877_v6  ;;  %v340_v6 = vrot.slane %v331_v7, %v84_v11 }
 0x12b   :  { %865 = vmatpush1.bf16.msra.mxu1 %v864_v5 }
 0x1d1   :  { %v416_v12 = vpop.f32.mrb[4].mxu0  ;;  %v493_v13 = vpop.f32.mrb[2].mxu1 }
 0x1d2   :  { %v417_v14 = vadd.f32 %v416_v12, %v336_v10  ;;  %v418_v15 = vpop.f32.mrb[5].mxu0  ;;  %v495_v16 = vpop.f32.mrb[3].mxu1 }
 0x1d3   :  { %v419_v17 = vadd.f32 %v418_v15, %v340_v6 }
 0x1d4   :  { %v494_v18 = vadd.f32 %v493_v13, %v417_v14 }
 0x1d5   :  { %v496_v19 = vadd.f32 %v495_v16, %v419_v17  ;;  %v499_v20 = vpop.f32.mrb[4].mxu1  ;;  %v422_v21 = vpop.f32.mrb[6].mxu0 }
 0x1d6   :  { %v423_v22 = vadd.f32 %v422_v21, %v336_v10  ;;  %v501_v23 = vpop.f32.mrb[5].mxu1  ;;  %v424_v24 = vpop.f32.mrb[7].mxu0  ;;  %v504_v27 = vmax.f32 %v494_v18, 0.0 }
 0x1d7   :  { %v505_v25 = vmax.f32 %v496_v19, 0.0  ;;  %v425_v26 = vadd.f32 %v424_v24, %v340_v6 }
 0x1d8   :  { %v500_v9 = vadd.f32 %v499_v20, %v423_v22 }
 0x1d9   :  { %v502_v28 = vadd.f32 %v501_v23, %v425_v26  ;;  %631 = vmatprep.mubr.msk.f32.mxu1 %vm343_vm0, %v505_v25 }
 0x1da   :  { %610 = vmatmul.mubr.f32.vlgmr.msra.gmra.mrb[6].mxu1 %v504_v27  ;;  %v506_v11 = vmax.f32 %v500_v9, 0.0 }
 0x1db   :  { %v507_v8 = vmax.f32 %v502_v28, 0.0 }
 0x1dd   :  { %632 = vmatprep.mubr.msk.f32.mxu1 %vm343_vm0, %v507_v8 }
 0x1de   :  { %615 = vmatmul.mubr.f32.gmra.mrb[8].mxu1 %v506_v11 }
 0x2ad   :  { %v611_v30 = vpop.f32.mrb[6].mxu1 }
 0x2ae   :  { %v612_v31 = vadd.f32 %v630_v29, %v611_v30  ;;  %v613_v32 = vpop.f32.mrb[7].mxu1 }
 0x2b0   :  { %621 = vst.msk [vmem:[%s1435_s7] sm:$0xff] %vm620_vm1, %v612_v31 }
 0x2b1   :  { %v616_v33 = vpop.f32.mrb[8].mxu1 }
 0x2b2   :  { %v617_v34 = vadd.f32 %v630_v29, %v616_v33  ;;  %v618_v35 = vpop.f32.mrb[9].mxu1 }
 0x2b4   :  { %623 = vst.msk [vmem:[%s1435_s7 + $0x8] sm:$0x3] %vm622_vm2, %v617_v34 }

</bundles_post_ra>
